<compile_context>
chip_gen: v6e
topology: v6e:2x2x1
jax: 0.10.0
libtpu: 0.0.40
codegen_flags: <defaults>
</compile_context>

<pallas_src>
import functools

import jax
import jax.numpy as jnp
from jax.experimental import pallas as pl
from jax.experimental.pallas import tpu as pltpu


def _round_up(x, m):
    return ((x + m - 1) // m) * m


def _softplus(x):
    # numerically stable log(1 + exp(x)); uses only exp/log (Mosaic-safe)
    return jnp.maximum(x, 0.0) + jnp.log(1.0 + jnp.exp(-jnp.abs(x)))


# --------------------------------------------------------------------------
# Kernel 1: main UltraGCN loss (loss_L + lambda * loss_I), batch-tiled
# --------------------------------------------------------------------------
def ultragcn_loss_kernel(user_ref, pos_ref, neg_ref, nbr_ref,
                         posw_ref, negw_ref, simw_ref, out_ref):
    u = user_ref[...].astype(jnp.float32)         # (TB, D)    bf16 -> f32
    p = pos_ref[...].astype(jnp.float32)          # (TB, D)
    ne = neg_ref[...].astype(jnp.float32)         # (TB, N, D)
    nb = nbr_ref[...].astype(jnp.float32)         # (TB, K, D)

    # scores: memory-bound batched mat-vec -> VPU multiply + lane reduce
    pos_s = jnp.sum(u * p, axis=-1, keepdims=True)            # (TB, 1)
    neg_s = jnp.sum(u[:, None, :] * ne, axis=-1)               # (TB, N)
    nbr_s = jnp.sum(u[:, None, :] * nb, axis=-1)               # (TB, K)

    # BCE-with-logits:
    #   pos / neighbor: w * softplus(-s) == -w * log(sigmoid(s))
    #   negatives     : w * softplus(+s) == -w * log(1 - sigmoid(s))
    loss = jnp.sum(posw_ref[...] * _softplus(-pos_s))
    loss = loss + jnp.sum(negw_ref[...] * _softplus(neg_s))
    loss = loss + jnp.sum(simw_ref[...] * _softplus(-nbr_s))

    # per-tile partial (f32), reduced across tiles in JAX
    out_ref[...] = jnp.full((1, 1, 1), loss, dtype=jnp.float32)


# --------------------------------------------------------------------------
# Kernel 2: sum-of-squares reduction of a 2-D parameter table (norm_loss)
# --------------------------------------------------------------------------
def sumsq_kernel(x_ref, out_ref, *, total_rows, tile_rows):
    i = pl.program_id(0)
    x = x_ref[...].astype(jnp.float32)
    # mask rows of a ragged last tile (select, not multiply -> garbage-safe)
    row = jax.lax.broadcasted_iota(jnp.int32, x.shape, 0) + i * tile_rows
    x = jnp.where(row < total_rows, x, 0.0)
    out_ref[...] = jnp.full((1, 1, 1), jnp.sum(x * x), dtype=jnp.float32)


def pallas_sumsq(x2d, tile_bytes=4 * 1024 * 1024):
    """Sum of squares of a 2-D table, streamed directly (no ravel/pad copy)."""
    rows, cols = x2d.shape
    itemsize = jnp.dtype(x2d.dtype).itemsize
    max_rows = max(8, ((tile_bytes // max(cols * itemsize, 1)) // 8) * 8)
    tile_rows = rows if rows <= max_rows else max_rows
    num_tiles = -(-rows // tile_rows)

    partials = pl.pallas_call(
        functools.partial(sumsq_kernel, total_rows=rows, tile_rows=tile_rows),
        out_shape=jax.ShapeDtypeStruct((num_tiles, 1, 1), jnp.float32),
        grid=(num_tiles,),
        in_specs=[pl.BlockSpec((tile_rows, cols), lambda i: (i, 0))],
        out_specs=pl.BlockSpec((1, 1, 1), lambda i: (i, 0, 0)),
        compiler_params=pltpu.CompilerParams(
            dimension_semantics=("parallel",),
            vmem_limit_bytes=32 * 1024 * 1024),
    )(x2d)
    return jnp.sum(partials)


# --------------------------------------------------------------------------
# Wrapper reproducing UltraGCN.forward(users, pos_items, neg_items)
# --------------------------------------------------------------------------
def _choose_tile_batch(B, D, n_neg, n_nbr, budget_bytes=20 * 1024 * 1024):
    # double-buffered bf16 embedding streams + f32 coefficient streams, per row
    per_row = 2 * ((2 + n_neg + n_nbr) * D * 2 + (1 + n_neg + n_nbr) * 4)
    tb = budget_bytes // max(per_row, 1)
    tb = int(max(8, min(2048, (tb // 8) * 8)))
    if B > 8:
        # keep num_tiles >= 2 so the "parallel" axis spans both v7x TensorCores
        half = _round_up(-(-B // 2), 8)
        tb = min(tb, half)
    return max(8, tb)


def ultragcn_forward(params, weights, users, pos_items, neg_items,
                     tile_batch=None):
    user_tbl = weights["user_embeds"]          # (U, D) f32
    item_tbl = weights["item_embeds"]          # (I, D) f32
    beta_uD = weights["beta_uD"]               # (U,)
    beta_iD = weights["beta_iD"]               # (I,)
    ii_nbr = weights["ii_neighbor_mat"]        # (I, K) int32
    ii_sim = weights["ii_constraint_mat"]      # (I, K) f32

    w1, w2 = params["w1"], params["w2"]
    w3, w4 = params["w3"], params["w4"]
    negative_weight = params["negative_weight"]
    lambda_ = params["lambda"]
    gamma = params["gamma"]

    B = users.shape[0]
    D = user_tbl.shape[1]
    N = neg_items.shape[1]
    K = ii_nbr.shape[1]

    # ---- row gathers (glue, plain JAX).  bf16 cast fuses into the gather so
    #      the HBM copy read by the kernel is already half-size; the kernel
    #      upcasts to f32 for all arithmetic.
    user_e = user_tbl[users].astype(jnp.bfloat16)                 # (B, D)
    pos_e = item_tbl[pos_items].astype(jnp.bfloat16)              # (B, D)
    neg_e = item_tbl[neg_items].astype(jnp.bfloat16)              # (B, N, D)
    nbr_e = item_tbl[ii_nbr[pos_items]].astype(jnp.bfloat16)      # (B, K, D)
    sim = ii_sim[pos_items]                                       # (B, K)
    beta_u = beta_uD[users]                                       # (B,)
    beta_pos = beta_iD[pos_items]                                 # (B,)
    beta_neg = beta_iD[neg_items]                                 # (B, N)

    # per-score coefficients (get_omegas + loss scalings), pre-folded, f32:
    if w2 > 0:
        pos_w = w1 + w2 * (beta_u * beta_pos)
    else:
        pos_w = jnp.full((B,), w1, jnp.float32)
    if w4 > 0:
        neg_w = w3 + w4 * (beta_u[:, None] * beta_neg)
    else:
        neg_w = jnp.full((B, N), w3, jnp.float32)
    pos_w = pos_w[:, None].astype(jnp.float32)                    # (B, 1)
    neg_w = (neg_w * (negative_weight / N)).astype(jnp.float32)   # (B, N)  mean folded in
    sim_w = (lambda_ * sim).astype(jnp.float32)                   # (B, K)

    # ---- batch tiling (no lane padding of D; padded batch rows have zero coefs)
    if tile_batch is None:
        TB = _choose_tile_batch(B, D, N, K)
    else:
        TB = max(8, (int(tile_batch) // 8) * 8)
    TB = min(TB, _round_up(B, 8))
    Bp = _round_up(B, TB)
    num_tiles = Bp // TB
    if Bp != B:
        pad = Bp - B
        pad_b = lambda a: jnp.pad(a, ((0, pad),) + ((0, 0),) * (a.ndim - 1))
        user_e, pos_e, neg_e, nbr_e = map(pad_b, (user_e, pos_e, neg_e, nbr_e))
        pos_w, neg_w, sim_w = map(pad_b, (pos_w, neg_w, sim_w))

    partials = pl.pallas_call(
        ultragcn_loss_kernel,
        out_shape=jax.ShapeDtypeStruct((num_tiles, 1, 1), jnp.float32),
        grid=(num_tiles,),
        in_specs=[
            pl.BlockSpec((TB, D), lambda i: (i, 0)),
            pl.BlockSpec((TB, D), lambda i: (i, 0)),
            pl.BlockSpec((TB, N, D), lambda i: (i, 0, 0)),
            pl.BlockSpec((TB, K, D), lambda i: (i, 0, 0)),
            pl.BlockSpec((TB, 1), lambda i: (i, 0)),
            pl.BlockSpec((TB, N), lambda i: (i, 0)),
            pl.BlockSpec((TB, K), lambda i: (i, 0)),
        ],
        out_specs=pl.BlockSpec((1, 1, 1), lambda i: (i, 0, 0)),
        compiler_params=pltpu.CompilerParams(
            dimension_semantics=("parallel",),
            vmem_limit_bytes=48 * 1024 * 1024),
    )(user_e, pos_e, neg_e, nbr_e, pos_w, neg_w, sim_w)

    main = jnp.sum(partials)              # loss_L + lambda * loss_I   (f32)

    # norm_loss = 0.5 * sum of squares of all parameters (streamed directly)
    norm_loss = 0.5 * (pallas_sumsq(user_tbl) + pallas_sumsq(item_tbl))

    return main + gamma * norm_loss


# --------------------------------------------------------------------------
# plain-JAX reference (mirrors the PyTorch module) for a correctness check
# --------------------------------------------------------------------------
def ultragcn_forward_ref(params, weights, users, pos_items, neg_items):
    user_tbl = weights["user_embeds"]
    item_tbl = weights["item_embeds"]
    beta_uD = weights["beta_uD"]
    beta_iD = weights["beta_iD"]
    ii_nbr = weights["ii_neighbor_mat"]
    ii_sim = weights["ii_constraint_mat"]

    u = user_tbl[users]
    p = item_tbl[pos_items]
    ne = item_tbl[neg_items]
    pos_w = params["w1"] + params["w2"] * beta_uD[users] * beta_iD[pos_items]
    neg_w = (params["w3"]
             + params["w4"] * beta_uD[users][:, None] * beta_iD[neg_items])
    pos_s = jnp.sum(u * p, -1)
    neg_s = jnp.sum(u[:, None, :] * ne, -1)
    pos_loss = pos_w * _softplus(-pos_s)
    neg_loss = jnp.mean(neg_w * _softplus(neg_s), -1)
    loss_L = jnp.sum(pos_loss + neg_loss * params["negative_weight"])

    nbr = item_tbl[ii_nbr[pos_items]]
    sim = ii_sim[pos_items]
    nbr_s = jnp.sum(u[:, None, :] * nbr, -1)
    loss_I = jnp.sum(sim * _softplus(-nbr_s))

    norm = 0.5 * (jnp.sum(user_tbl ** 2) + jnp.sum(item_tbl ** 2))
    return loss_L + params["gamma"] * norm + params["lambda"] * loss_I


# --------------------------------------------------------------------------
if __name__ == "__main__":
    # Small synthetic configuration
    num_users, num_items = 64, 128
    emb_dim = 50          # matches the module spec; not a lane multiple
    batch = 16
    n_neg = 5
    n_nbr = 4

    params = {
        "w1": 1.0, "w2": 1.0, "w3": 1.0, "w4": 1.0,
        "negative_weight": 1.0, "gamma": 1e-5, "lambda": 1e-5,
        "initial_weight": 0.1,
    }

    key = jax.random.PRNGKey(0)
    k_u, k_i, k_du, k_di, k_nbr, k_sim, k_usr, k_pos, k_neg = (
        jax.random.split(key, 9))

    user_embeds = params["initial_weight"] * jax.random.normal(
        k_u, (num_users, emb_dim), dtype=jnp.float32)
    item_embeds = params["initial_weight"] * jax.random.normal(
        k_i, (num_items, emb_dim), dtype=jnp.float32)

    users_D = jax.random.randint(k_du, (num_users,), 1, 20).astype(jnp.float32)
    items_D = jax.random.randint(k_di, (num_items,), 1, 20).astype(jnp.float32)
    beta_uD = jnp.sqrt(users_D + 1.0) / (users_D + 1e-8)
    beta_iD = 1.0 / jnp.sqrt(items_D + 1.0)

    ii_neighbor_mat = jax.random.randint(
        k_nbr, (num_items, n_nbr), 0, num_items, dtype=jnp.int32)
    ii_constraint_mat = jax.random.uniform(
        k_sim, (num_items, n_nbr), dtype=jnp.float32)

    weights = {
        "user_embeds": user_embeds,
        "item_embeds": item_embeds,
        "beta_uD": beta_uD,
        "beta_iD": beta_iD,
        "ii_neighbor_mat": ii_neighbor_mat,
        "ii_constraint_mat": ii_constraint_mat,
    }

    users = jax.random.randint(k_usr, (batch,), 0, num_users, dtype=jnp.int32)
    pos_items = jax.random.randint(k_pos, (batch,), 0, num_items,
                                   dtype=jnp.int32)
    neg_items = jax.random.randint(
        k_neg, (batch, n_neg), 0, num_items, dtype=jnp.int32)

    # auto tile choice gives TB=8 -> 2 batch tiles (exercises the pipelined grid)
    fwd = jax.jit(lambda w, u, p, n: ultragcn_forward(params, w, u, p, n))
    loss = fwd(weights, users, pos_items, neg_items)
    jax.block_until_ready(loss)

    ref = ultragcn_forward_ref(params, weights, users, pos_items, neg_items)

    assert loss.shape == () and bool(jnp.isfinite(loss))
    # slightly looser tolerance: embeddings are streamed as bf16 (f32 accum)
    assert bool(jnp.allclose(loss, ref, rtol=1e-2, atol=1e-2)), (loss, ref)
    print("KERNEL_OK")
</pallas_src>

<mosaic_0001>
module attributes {stable_mosaic.version = 11 : i64} {
  func.func @sumsq_kernel(%arg0: i32, %arg1: memref<64x50xf32, #tpu.memory_space<vmem>>, %arg2: memref<1x1x1xf32, #tpu.memory_space<vmem>>) attributes {dimension_semantics = [#tpu.dimension_semantics<parallel>], iteration_bounds = array<i64: 1>, scalar_prefetch = 0 : i64, scratch_operands = 0 : i64, tpu.core_type = #tpu.core_type<tc>, window_params = [{transform_indices = @transform_0, window_bounds = array<i64: 64, 50>}, {transform_indices = @transform_1, window_bounds = array<i64: 1, 1, 1>}]} {
    %c0 = arith.constant 0 : index
    %c0_0 = arith.constant 0 : index
    %0 = vector.load %arg1[%c0, %c0_0] : memref<64x50xf32, #tpu.memory_space<vmem>>, vector<64x50xf32>
    %1 = tpu.iota {dimensions = array<i32: 0>} : vector<64x50xi32>
    %c64_i32 = arith.constant 64 : i32
    %2 = arith.muli %arg0, %c64_i32 : i32
    %3 = vector.broadcast %2 : i32 to vector<64x50xi32>
    %4 = arith.addi %1, %3 : vector<64x50xi32>
    %c64_i32_1 = arith.constant 64 : i32
    %5 = vector.broadcast %c64_i32_1 : i32 to vector<64x50xi32>
    %6 = arith.cmpi slt, %4, %5 : vector<64x50xi32>
    %cst = arith.constant 0.000000e+00 : f32
    %7 = vector.broadcast %cst : f32 to vector<64x50xf32>
    %8 = arith.select %6, %0, %7 : vector<64x50xi1>, vector<64x50xf32>
    %9 = arith.mulf %8, %8 : vector<64x50xf32>
    %10 = vector.shape_cast %9 : vector<64x50xf32> to vector<1x64x50xf32>
    %cst_2 = arith.constant dense<0.000000e+00> : vector<1xf32>
    %11 = vector.multi_reduction <add>, %10, %cst_2 [1, 2] : vector<1x64x50xf32> to vector<1xf32>
    %12 = vector.shape_cast %11 : vector<1xf32> to vector<1x1x1xf32>
    %13 = vector.extract %12[0, 0, 0] : f32 from vector<1x1x1xf32>
    %14 = vector.broadcast %13 : f32 to vector<1x1x1xf32>
    %c0_3 = arith.constant 0 : index
    %c0_4 = arith.constant 0 : index
    %c0_5 = arith.constant 0 : index
    %15 = vector.load %arg2[%c0_3, %c0_4, %c0_5] : memref<1x1x1xf32, #tpu.memory_space<vmem>>, vector<1x1x1xf32>
    tpu.vector_store %arg2[%c0_3, %c0_4, %c0_5], %14 {strides = array<i32>} : memref<1x1x1xf32, #tpu.memory_space<vmem>>, vector<1x1x1xf32>,
    return
  }
  func.func @transform_0(%arg0: i32) -> (i32, i32) {
    %c0_i32 = arith.constant 0 : i32
    %c0_i32_0 = arith.constant 0 : i32
    return %arg0, %c0_i32 : i32, i32
  }
  func.func @transform_1(%arg0: i32) -> (i32, i32, i32) {
    %c0_i32 = arith.constant 0 : i32
    %c0_i32_0 = arith.constant 0 : i32
    %c0_i32_1 = arith.constant 0 : i32
    return %arg0, %c0_i32, %c0_i32_0 : i32, i32, i32
  }
}

module attributes {stable_mosaic.version = 11 : i64} {
  func.func @sumsq_kernel(%arg0: i32, %arg1: memref<128x50xf32, #tpu.memory_space<vmem>>, %arg2: memref<1x1x1xf32, #tpu.memory_space<vmem>>) attributes {dimension_semantics = [#tpu.dimension_semantics<parallel>], iteration_bounds = array<i64: 1>, scalar_prefetch = 0 : i64, scratch_operands = 0 : i64, tpu.core_type = #tpu.core_type<tc>, window_params = [{transform_indices = @transform_0, window_bounds = array<i64: 128, 50>}, {transform_indices = @transform_1, window_bounds = array<i64: 1, 1, 1>}]} {
    %c0 = arith.constant 0 : index
    %c0_0 = arith.constant 0 : index
    %0 = vector.load %arg1[%c0, %c0_0] : memref<128x50xf32, #tpu.memory_space<vmem>>, vector<128x50xf32>
    %1 = tpu.iota {dimensions = array<i32: 0>} : vector<128x50xi32>
    %c128_i32 = arith.constant 128 : i32
    %2 = arith.muli %arg0, %c128_i32 : i32
    %3 = vector.broadcast %2 : i32 to vector<128x50xi32>
    %4 = arith.addi %1, %3 : vector<128x50xi32>
    %c128_i32_1 = arith.constant 128 : i32
    %5 = vector.broadcast %c128_i32_1 : i32 to vector<128x50xi32>
    %6 = arith.cmpi slt, %4, %5 : vector<128x50xi32>
    %cst = arith.constant 0.000000e+00 : f32
    %7 = vector.broadcast %cst : f32 to vector<128x50xf32>
    %8 = arith.select %6, %0, %7 : vector<128x50xi1>, vector<128x50xf32>
    %9 = arith.mulf %8, %8 : vector<128x50xf32>
    %10 = vector.shape_cast %9 : vector<128x50xf32> to vector<1x128x50xf32>
    %cst_2 = arith.constant dense<0.000000e+00> : vector<1xf32>
    %11 = vector.multi_reduction <add>, %10, %cst_2 [1, 2] : vector<1x128x50xf32> to vector<1xf32>
    %12 = vector.shape_cast %11 : vector<1xf32> to vector<1x1x1xf32>
    %13 = vector.extract %12[0, 0, 0] : f32 from vector<1x1x1xf32>
    %14 = vector.broadcast %13 : f32 to vector<1x1x1xf32>
    %c0_3 = arith.constant 0 : index
    %c0_4 = arith.constant 0 : index
    %c0_5 = arith.constant 0 : index
    %15 = vector.load %arg2[%c0_3, %c0_4, %c0_5] : memref<1x1x1xf32, #tpu.memory_space<vmem>>, vector<1x1x1xf32>
    tpu.vector_store %arg2[%c0_3, %c0_4, %c0_5], %14 {strides = array<i32>} : memref<1x1x1xf32, #tpu.memory_space<vmem>>, vector<1x1x1xf32>,
    return
  }
  func.func @transform_0(%arg0: i32) -> (i32, i32) {
    %c0_i32 = arith.constant 0 : i32
    %c0_i32_0 = arith.constant 0 : i32
    return %arg0, %c0_i32 : i32, i32
  }
  func.func @transform_1(%arg0: i32) -> (i32, i32, i32) {
    %c0_i32 = arith.constant 0 : i32
    %c0_i32_0 = arith.constant 0 : i32
    %c0_i32_1 = arith.constant 0 : i32
    return %arg0, %c0_i32, %c0_i32_0 : i32, i32, i32
  }
}

module attributes {stable_mosaic.version = 11 : i64} {
  func.func @ultragcn_loss_kernel(%arg0: i32, %arg1: memref<8x50xbf16, #tpu.memory_space<vmem>>, %arg2: memref<8x50xbf16, #tpu.memory_space<vmem>>, %arg3: memref<8x5x50xbf16, #tpu.memory_space<vmem>>, %arg4: memref<8x4x50xbf16, #tpu.memory_space<vmem>>, %arg5: memref<8x1xf32, #tpu.memory_space<vmem>>, %arg6: memref<8x5xf32, #tpu.memory_space<vmem>>, %arg7: memref<8x4xf32, #tpu.memory_space<vmem>>, %arg8: memref<1x1x1xf32, #tpu.memory_space<vmem>>) attributes {dimension_semantics = [#tpu.dimension_semantics<parallel>], iteration_bounds = array<i64: 2>, scalar_prefetch = 0 : i64, scratch_operands = 0 : i64, tpu.core_type = #tpu.core_type<tc>, window_params = [{transform_indices = @transform_0, window_bounds = array<i64: 8, 50>}, {transform_indices = @transform_1, window_bounds = array<i64: 8, 50>}, {transform_indices = @transform_2, window_bounds = array<i64: 8, 5, 50>}, {transform_indices = @transform_3, window_bounds = array<i64: 8, 4, 50>}, {transform_indices = @transform_4, window_bounds = array<i64: 8, 1>}, {transform_indices = @transform_5, window_bounds = array<i64: 8, 5>}, {transform_indices = @transform_6, window_bounds = array<i64: 8, 4>}, {transform_indices = @transform_7, window_bounds = array<i64: 1, 1, 1>}]} {
    %c0 = arith.constant 0 : index
    %c0_0 = arith.constant 0 : index
    %0 = vector.load %arg1[%c0, %c0_0] : memref<8x50xbf16, #tpu.memory_space<vmem>>, vector<8x50xbf16>
    %1 = arith.extf %0 : vector<8x50xbf16> to vector<8x50xf32>
    %c0_1 = arith.constant 0 : index
    %c0_2 = arith.constant 0 : index
    %2 = vector.load %arg2[%c0_1, %c0_2] : memref<8x50xbf16, #tpu.memory_space<vmem>>, vector<8x50xbf16>
    %3 = arith.extf %2 : vector<8x50xbf16> to vector<8x50xf32>
    %c0_3 = arith.constant 0 : index
    %c0_4 = arith.constant 0 : index
    %c0_5 = arith.constant 0 : index
    %4 = vector.load %arg3[%c0_3, %c0_4, %c0_5] : memref<8x5x50xbf16, #tpu.memory_space<vmem>>, vector<8x5x50xbf16>
    %5 = arith.extf %4 : vector<8x5x50xbf16> to vector<8x5x50xf32>
    %c0_6 = arith.constant 0 : index
    %c0_7 = arith.constant 0 : index
    %c0_8 = arith.constant 0 : index
    %6 = vector.load %arg4[%c0_6, %c0_7, %c0_8] : memref<8x4x50xbf16, #tpu.memory_space<vmem>>, vector<8x4x50xbf16>
    %7 = arith.extf %6 : vector<8x4x50xbf16> to vector<8x4x50xf32>
    %8 = arith.mulf %1, %3 : vector<8x50xf32>
    %cst = arith.constant dense<0.000000e+00> : vector<8xf32>
    %9 = vector.multi_reduction <add>, %8, %cst [1] : vector<8x50xf32> to vector<8xf32>
    %10 = vector.shape_cast %9 : vector<8xf32> to vector<8x1xf32>
    %11 = vector.shape_cast %1 : vector<8x50xf32> to vector<8x1x50xf32>
    %12 = vector.broadcast %11 : vector<8x1x50xf32> to vector<8x5x50xf32>
    %13 = arith.mulf %12, %5 : vector<8x5x50xf32>
    %cst_9 = arith.constant dense<0.000000e+00> : vector<8x5xf32>
    %14 = vector.multi_reduction <add>, %13, %cst_9 [2] : vector<8x5x50xf32> to vector<8x5xf32>
    %15 = vector.shape_cast %1 : vector<8x50xf32> to vector<8x1x50xf32>
    %16 = vector.broadcast %15 : vector<8x1x50xf32> to vector<8x4x50xf32>
    %17 = arith.mulf %16, %7 : vector<8x4x50xf32>
    %cst_10 = arith.constant dense<0.000000e+00> : vector<8x4xf32>
    %18 = vector.multi_reduction <add>, %17, %cst_10 [2] : vector<8x4x50xf32> to vector<8x4xf32>
    %c0_11 = arith.constant 0 : index
    %c0_12 = arith.constant 0 : index
    %19 = vector.load %arg5[%c0_11, %c0_12] : memref<8x1xf32, #tpu.memory_space<vmem>>, vector<8x1xf32>
    %cst_13 = arith.constant 0.000000e+00 : f32
    %20 = vector.broadcast %cst_13 : f32 to vector<8x1xf32>
    %21 = arith.subf %20, %10 : vector<8x1xf32>
    %cst_14 = arith.constant 0.000000e+00 : f32
    %22 = vector.broadcast %cst_14 : f32 to vector<8x1xf32>
    %23 = arith.maximumf %21, %22 : vector<8x1xf32>
    %24 = math.absf %21 : vector<8x1xf32>
    %cst_15 = arith.constant 0.000000e+00 : f32
    %25 = vector.broadcast %cst_15 : f32 to vector<8x1xf32>
    %26 = arith.subf %25, %24 : vector<8x1xf32>
    %27 = math.exp %26 : vector<8x1xf32>
    %cst_16 = arith.constant 1.000000e+00 : f32
    %28 = vector.broadcast %cst_16 : f32 to vector<8x1xf32>
    %29 = arith.addf %28, %27 : vector<8x1xf32>
    %30 = math.log %29 : vector<8x1xf32>
    %31 = arith.addf %23, %30 : vector<8x1xf32>
    %32 = arith.mulf %19, %31 : vector<8x1xf32>
    %33 = vector.shape_cast %32 : vector<8x1xf32> to vector<1x8x1xf32>
    %cst_17 = arith.constant dense<0.000000e+00> : vector<1xf32>
    %34 = vector.multi_reduction <add>, %33, %cst_17 [1, 2] : vector<1x8x1xf32> to vector<1xf32>
    %35 = vector.shape_cast %34 : vector<1xf32> to vector<1x1x1xf32>
    %36 = vector.extract %35[0, 0, 0] : f32 from vector<1x1x1xf32>
    %c0_18 = arith.constant 0 : index
    %c0_19 = arith.constant 0 : index
    %37 = vector.load %arg6[%c0_18, %c0_19] : memref<8x5xf32, #tpu.memory_space<vmem>>, vector<8x5xf32>
    %cst_20 = arith.constant 0.000000e+00 : f32
    %38 = vector.broadcast %cst_20 : f32 to vector<8x5xf32>
    %39 = arith.maximumf %14, %38 : vector<8x5xf32>
    %40 = math.absf %14 : vector<8x5xf32>
    %cst_21 = arith.constant 0.000000e+00 : f32
    %41 = vector.broadcast %cst_21 : f32 to vector<8x5xf32>
    %42 = arith.subf %41, %40 : vector<8x5xf32>
    %43 = math.exp %42 : vector<8x5xf32>
    %cst_22 = arith.constant 1.000000e+00 : f32
    %44 = vector.broadcast %cst_22 : f32 to vector<8x5xf32>
    %45 = arith.addf %44, %43 : vector<8x5xf32>
    %46 = math.log %45 : vector<8x5xf32>
    %47 = arith.addf %39, %46 : vector<8x5xf32>
    %48 = arith.mulf %37, %47 : vector<8x5xf32>
    %49 = vector.shape_cast %48 : vector<8x5xf32> to vector<1x8x5xf32>
    %cst_23 = arith.constant dense<0.000000e+00> : vector<1xf32>
    %50 = vector.multi_reduction <add>, %49, %cst_23 [1, 2] : vector<1x8x5xf32> to vector<1xf32>
    %51 = vector.shape_cast %50 : vector<1xf32> to vector<1x1x1xf32>
    %52 = vector.extract %51[0, 0, 0] : f32 from vector<1x1x1xf32>
    %53 = arith.addf %36, %52 : f32
    %c0_24 = arith.constant 0 : index
    %c0_25 = arith.constant 0 : index
    %54 = vector.load %arg7[%c0_24, %c0_25] : memref<8x4xf32, #tpu.memory_space<vmem>>, vector<8x4xf32>
    %cst_26 = arith.constant 0.000000e+00 : f32
    %55 = vector.broadcast %cst_26 : f32 to vector<8x4xf32>
    %56 = arith.subf %55, %18 : vector<8x4xf32>
    %cst_27 = arith.constant 0.000000e+00 : f32
    %57 = vector.broadcast %cst_27 : f32 to vector<8x4xf32>
    %58 = arith.maximumf %56, %57 : vector<8x4xf32>
    %59 = math.absf %56 : vector<8x4xf32>
    %cst_28 = arith.constant 0.000000e+00 : f32
    %60 = vector.broadcast %cst_28 : f32 to vector<8x4xf32>
    %61 = arith.subf %60, %59 : vector<8x4xf32>
    %62 = math.exp %61 : vector<8x4xf32>
    %cst_29 = arith.constant 1.000000e+00 : f32
    %63 = vector.broadcast %cst_29 : f32 to vector<8x4xf32>
    %64 = arith.addf %63, %62 : vector<8x4xf32>
    %65 = math.log %64 : vector<8x4xf32>
    %66 = arith.addf %58, %65 : vector<8x4xf32>
    %67 = arith.mulf %54, %66 : vector<8x4xf32>
    %68 = vector.shape_cast %67 : vector<8x4xf32> to vector<1x8x4xf32>
    %cst_30 = arith.constant dense<0.000000e+00> : vector<1xf32>
    %69 = vector.multi_reduction <add>, %68, %cst_30 [1, 2] : vector<1x8x4xf32> to vector<1xf32>
    %70 = vector.shape_cast %69 : vector<1xf32> to vector<1x1x1xf32>
    %71 = vector.extract %70[0, 0, 0] : f32 from vector<1x1x1xf32>
    %72 = arith.addf %53, %71 : f32
    %73 = vector.broadcast %72 : f32 to vector<1x1x1xf32>
    %c0_31 = arith.constant 0 : index
    %c0_32 = arith.constant 0 : index
    %c0_33 = arith.constant 0 : index
    %74 = vector.load %arg8[%c0_31, %c0_32, %c0_33] : memref<1x1x1xf32, #tpu.memory_space<vmem>>, vector<1x1x1xf32>
    tpu.vector_store %arg8[%c0_31, %c0_32, %c0_33], %73 {strides = array<i32>} : memref<1x1x1xf32, #tpu.memory_space<vmem>>, vector<1x1x1xf32>,
    return
  }
  func.func @transform_0(%arg0: i32) -> (i32, i32) {
    %c0_i32 = arith.constant 0 : i32
    %c0_i32_0 = arith.constant 0 : i32
    return %arg0, %c0_i32 : i32, i32
  }
  func.func @transform_1(%arg0: i32) -> (i32, i32) {
    %c0_i32 = arith.constant 0 : i32
    %c0_i32_0 = arith.constant 0 : i32
    return %arg0, %c0_i32 : i32, i32
  }
  func.func @transform_2(%arg0: i32) -> (i32, i32, i32) {
    %c0_i32 = arith.constant 0 : i32
    %c0_i32_0 = arith.constant 0 : i32
    %c0_i32_1 = arith.constant 0 : i32
    return %arg0, %c0_i32, %c0_i32_0 : i32, i32, i32
  }
  func.func @transform_3(%arg0: i32) -> (i32, i32, i32) {
    %c0_i32 = arith.constant 0 : i32
    %c0_i32_0 = arith.constant 0 : i32
    %c0_i32_1 = arith.constant 0 : i32
    return %arg0, %c0_i32, %c0_i32_0 : i32, i32, i32
  }
  func.func @transform_4(%arg0: i32) -> (i32, i32) {
    %c0_i32 = arith.constant 0 : i32
    %c0_i32_0 = arith.constant 0 : i32
    return %arg0, %c0_i32 : i32, i32
  }
  func.func @transform_5(%arg0: i32) -> (i32, i32) {
    %c0_i32 = arith.constant 0 : i32
    %c0_i32_0 = arith.constant 0 : i32
    return %arg0, %c0_i32 : i32, i32
  }
  func.func @transform_6(%arg0: i32) -> (i32, i32) {
    %c0_i32 = arith.constant 0 : i32
    %c0_i32_0 = arith.constant 0 : i32
    return %arg0, %c0_i32 : i32, i32
  }
  func.func @transform_7(%arg0: i32) -> (i32, i32, i32) {
    %c0_i32 = arith.constant 0 : i32
    %c0_i32_0 = arith.constant 0 : i32
    %c0_i32_1 = arith.constant 0 : i32
    return %arg0, %c0_i32, %c0_i32_0 : i32, i32, i32
  }
}

</mosaic_0001>

<bundles_post_ra>
// kernel: _lambda_.5
= control target key start
LH: loop header
LB: loop body
LE: loop exit
PB: predicated region body
PF: predicated region fallthrough
CT: control target
= control target key end

     0   :  { %vm108_vm0 = vcmask 408576   ;;  %s269_s0 = inlined_call_operand.vmem [shape: f32[128,50], index: 0, kind: input, shape index: {}]   ;;  %s270_s1 = inlined_call_operand.hbm [shape: f32[1,1,1], index: 1, kind: output, shape index: {}]  }
   0x1   :  { %v9_v0 = vld [vmem:[%s269_s0] sm:$0xff]  ;;  %v10_v1 = vld [vmem:[%s269_s0 + $0x8] sm:$0xff]  ;;  %v11_v2 = vld [vmem:[%s269_s0 + $0x10] sm:$0xff] }
   0x2   :  { %v12_v3 = vld [vmem:[%s269_s0 + $0x18] sm:$0xff]  ;;  %v13_v4 = vld [vmem:[%s269_s0 + $0x20] sm:$0xff]  ;;  %v92_v5 = vmul.f32 %v9_v0, %v9_v0  ;;  %v93_v6 = vmul.f32 %v10_v1, %v10_v1  ;;  %v94_v7 = vmul.f32 %v11_v2, %v11_v2  ;;  %v14_v9 = vld [vmem:[%s269_s0 + $0x28] sm:$0xff] }
   0x3   :  { %v95_v8 = vmul.f32 %v12_v3, %v12_v3  ;;  %v96_v11 = vmul.f32 %v13_v4, %v13_v4  ;;  %v15_v13 = vld [vmem:[%s269_s0 + $0x30] sm:$0xff] }
   0x4   :  { %v109_v10 = vsel %vm108_vm0, %v92_v5, 0.0  ;;  %v110_v12 = vsel %vm108_vm0, %v93_v6, 0.0 }
   0x5   :  { %v111_v14 = vadd.f32 %v110_v12, %v109_v10 }
   0x6   :  { %6 = vsyncpa [#allocation3], 0  ;;  %v97_v15 = vmul.f32 %v14_v9, %v14_v9  ;;  %v112_v16 = vsel %vm108_vm0, %v94_v7, 0.0  ;;  %v114_v17 = vsel %vm108_vm0, %v95_v8, 0.0  ;;  %v16_v18 = vld [vmem:[%s269_s0 + $0x38] sm:$0xff]  ;;  %v98_v20 = vmul.f32 %v15_v13, %v15_v13  ;;  %v17_v22 = vld [vmem:[%s269_s0 + $0x40] sm:$0xff] }
   0x7   :  { %v113_v19 = vadd.f32 %v112_v16, %v111_v14  ;;  %v116_v21 = vsel %vm108_vm0, %v96_v11, 0.0  ;;  %v99_v24 = vmul.f32 %v16_v18, %v16_v18  ;;  %v18_v26 = vld [vmem:[%s269_s0 + $0x48] sm:$0xff]  ;;  %v100_v28 = vmul.f32 %v17_v22, %v17_v22  ;;  %v19_v30 = vld [vmem:[%s269_s0 + $0x50] sm:$0xff]  ;;  %v20_v34 = vld [vmem:[%s269_s0 + $0x58] sm:$0xff] }
   0x8   :  { %v118_v25 = vsel %vm108_vm0, %v97_v15, 0.0  ;;  %v120_v29 = vsel %vm108_vm0, %v98_v20, 0.0  ;;  %v101_v32 = vmul.f32 %v18_v26, %v18_v26  ;;  %v102_v36 = vmul.f32 %v19_v30, %v19_v30  ;;  %v21_v38 = vld [vmem:[%s269_s0 + $0x60] sm:$0xff]  ;;  %v22_v42 = vld [vmem:[%s269_s0 + $0x68] sm:$0xff]  ;;  %v23_v46 = vld [vmem:[%s269_s0 + $0x70] sm:$0xff] }
   0x9   :  { %v115_v23 = vadd.f32 %v114_v17, %v113_v19  ;;  %v122_v33 = vsel %vm108_vm0, %v99_v24, 0.0  ;;  %v124_v37 = vsel %vm108_vm0, %v100_v28, 0.0  ;;  %v103_v40 = vmul.f32 %v20_v34, %v20_v34  ;;  %v24_v50 = vld [vmem:[%s269_s0 + $0x78] sm:$0xff]  ;;  %s191_s0 = smov [#allocation2]  }
   0xa   :  { %v126_v41 = vsel %vm108_vm0, %v101_v32, 0.0  ;;  %v104_v44 = vmul.f32 %v21_v38, %v21_v38  ;;  %v128_v45 = vsel %vm108_vm0, %v102_v36, 0.0  ;;  %v105_v48 = vmul.f32 %v22_v42, %v22_v42  ;;  %s158_s9 = sshll.u32 %s191_s0, 4  ;;  %s159_s9 = int_to_ptr.vmem [resolvable:$true] %s158_s9 }
   0xb   :  { %v117_v27 = vadd.f32 %v116_v21, %v115_v23  ;;  %v130_v49 = vsel %vm108_vm0, %v103_v40, 0.0  ;;  %v106_v52 = vmul.f32 %v23_v46, %v23_v46  ;;  %v107_v55 = vmul.f32 %v24_v50, %v24_v50  ;;  %s169_s11 = scalar_lea.vmem %s159_s9, 16  ;;  %s173_s12 = scalar_lea.vmem %s159_s9, 32 }
   0xc   :  { %v132_v53 = vsel %vm108_vm0, %v104_v44, 0.0  ;;  %v134_v56 = vsel %vm108_vm0, %v105_v48, 0.0  ;;  %vm150_vm1 = vcmask 0   ;;  %p170_p0 = scmp.ne.s32.totalorder %s159_s9, %s169_s11  ;;  %p174_p1 = scmp.lt.s32.totalorder %s159_s9, %s159_s9 }
   0xd   :  { %v119_v31 = vadd.f32 %v118_v25, %v117_v27  ;;  %v136_v58 = vsel %vm108_vm0, %v106_v52, 0.0  ;;  %v138_v60 = vsel %vm108_vm0, %v107_v55, 0.0  ;;  %p175_p2 = scmp.lt.s32.totalorder %s173_s12, %s169_s11 }
   0xf   :  { %v121_v35 = vadd.f32 %v120_v29, %v119_v31  ;;  %p176_p3 = por %p175_p2, %p174_p1 }
  0x11   :  { %v123_v39 = vadd.f32 %v122_v33, %v121_v35  ;;  %p177_p4 = pnand %p176_p3, %p170_p0 }
  0x13   :  { %v125_v43 = vadd.f32 %v124_v37, %v123_v39 }
  0x15   :  { %v127_v47 = vadd.f32 %v126_v41, %v125_v43 }
  0x17   :  { %v129_v51 = vadd.f32 %v128_v45, %v127_v47 }
  0x19   :  { %v131_v54 = vadd.f32 %v130_v49, %v129_v51 }
  0x1b   :  { %v133_v57 = vadd.f32 %v132_v53, %v131_v54 }
  0x1d   :  { %v135_v59 = vadd.f32 %v134_v56, %v133_v57 }
  0x1f   :  { %v137_v61 = vadd.f32 %v136_v58, %v135_v59 }
  0x21   :  { %v139_v62 = vadd.f32 %v138_v60, %v137_v61 }
  0x23   :  { %140 = vadd.xlane.f32.xlu0 %v139_v62 }
  0xac   :  { %v141_v63 = vpop.xlane.xlu0 %140 }
  0xad   :  { %v142_v0 = vrot.slane %v141_v63, 4 }
  0xaf   :  { %v143_v1 = vadd.f32 %v142_v0, %v141_v63 }
  0xb1   :  { %v144_v2 = vrot.slane %v143_v1, 2 }
  0xb3   :  { %v145_v3 = vadd.f32 %v144_v2, %v143_v1 }
  0xb5   :  { %v146_v4 = vrot.slane %v145_v3, 1 }
  0xb7   :  { %v147_v5 = vadd.f32 %v146_v4, %v145_v3 }
  0xb9   :  { %166 = vpush %v147_v5 }
  0xea   :  { %s167_s10 = spop %166 }
  0xeb   :  { %v149_v6 = vstv %s167_s10 }
  0xec   :  { %151 = vst.msk [vmem:[#allocation2] sm:$0x1] %vm150_vm1, %v149_v6 }
  0xed   :  { %180 = shalt.err (!%p177_p4)
}
  0xee   :  { %161 = dma.vmem_to_hbm [thread:$0]  %s159_s9, 16, %s270_s1, [#allocation3]  }
  0xef   :  { %189 = dma.done.wait [#allocation3], 16  }
  0xf0   :  { %190 = vsyncadd [#allocation3], 4294967280 }
  0xf1   :  { %165 = vsyncpa [#allocation3], 1 }

// kernel: _lambda_.4
= control target key start
LH: loop header
LB: loop body
LE: loop exit
PB: predicated region body
PF: predicated region fallthrough
CT: control target
= control target key end

     0   :  { %vm60_vm0 = vcmask 408576   ;;  %s173_s0 = inlined_call_operand.vmem [shape: f32[64,50], index: 0, kind: input, shape index: {}]   ;;  %s174_s1 = inlined_call_operand.hbm [shape: f32[1,1,1], index: 1, kind: output, shape index: {}]  }
   0x1   :  { %v9_v0 = vld [vmem:[%s173_s0] sm:$0xff]  ;;  %v10_v1 = vld [vmem:[%s173_s0 + $0x8] sm:$0xff]  ;;  %v11_v2 = vld [vmem:[%s173_s0 + $0x10] sm:$0xff] }
   0x2   :  { %v12_v3 = vld [vmem:[%s173_s0 + $0x18] sm:$0xff]  ;;  %v13_v4 = vld [vmem:[%s173_s0 + $0x20] sm:$0xff]  ;;  %v52_v5 = vmul.f32 %v9_v0, %v9_v0  ;;  %v53_v6 = vmul.f32 %v10_v1, %v10_v1  ;;  %v54_v7 = vmul.f32 %v11_v2, %v11_v2  ;;  %v14_v8 = vld [vmem:[%s173_s0 + $0x28] sm:$0xff] }
   0x3   :  { %v55_v9 = vmul.f32 %v12_v3, %v12_v3 }
   0x4   :  { %6 = vsyncpa [#allocation3], 0  ;;  %v56_v10 = vmul.f32 %v13_v4, %v13_v4  ;;  %v61_v11 = vsel %vm60_vm0, %v52_v5, 0.0  ;;  %v62_v12 = vsel %vm60_vm0, %v53_v6, 0.0  ;;  %v15_v13 = vld [vmem:[%s173_s0 + $0x30] sm:$0xff]  ;;  %v64_v15 = vsel %vm60_vm0, %v54_v7, 0.0 }
   0x5   :  { %v63_v14 = vadd.f32 %v62_v12, %v61_v11  ;;  %v57_v16 = vmul.f32 %v14_v8, %v14_v8  ;;  %v66_v17 = vsel %vm60_vm0, %v55_v9, 0.0  ;;  %v16_v18 = vld [vmem:[%s173_s0 + $0x38] sm:$0xff]  ;;  %v58_v20 = vmul.f32 %v15_v13, %v15_v13  ;;  %s127_s0 = smov [#allocation2]  }
   0x6   :  { %v68_v21 = vsel %vm60_vm0, %v56_v10, 0.0  ;;  %v59_v23 = vmul.f32 %v16_v18, %v16_v18  ;;  %s94_s22 = sshll.u32 %s127_s0, 4  ;;  %vm86_vm1 = vcmask 0   ;;  %s95_s22 = int_to_ptr.vmem [resolvable:$true] %s94_s22 }
   0x7   :  { %v65_v19 = vadd.f32 %v64_v15, %v63_v14  ;;  %v70_v24 = vsel %vm60_vm0, %v57_v16, 0.0  ;;  %v72_v26 = vsel %vm60_vm0, %v58_v20, 0.0  ;;  %s105_s24 = scalar_lea.vmem %s95_s22, 16  ;;  %s109_s25 = scalar_lea.vmem %s95_s22, 32 }
   0x8   :  { %v74_v28 = vsel %vm60_vm0, %v59_v23, 0.0  ;;  %p106_p0 = scmp.ne.s32.totalorder %s95_s22, %s105_s24  ;;  %p110_p1 = scmp.lt.s32.totalorder %s95_s22, %s95_s22 }
   0x9   :  { %v67_v22 = vadd.f32 %v66_v17, %v65_v19  ;;  %p111_p2 = scmp.lt.s32.totalorder %s109_s25, %s105_s24 }
   0xb   :  { %v69_v25 = vadd.f32 %v68_v21, %v67_v22  ;;  %p112_p3 = por %p111_p2, %p110_p1 }
   0xd   :  { %v71_v27 = vadd.f32 %v70_v24, %v69_v25  ;;  %p113_p4 = pnand %p112_p3, %p106_p0 }
   0xf   :  { %v73_v29 = vadd.f32 %v72_v26, %v71_v27 }
  0x11   :  { %v75_v30 = vadd.f32 %v74_v28, %v73_v29 }
  0x13   :  { %76 = vadd.xlane.f32.xlu0 %v75_v30 }
  0x9c   :  { %v77_v31 = vpop.xlane.xlu0 %76 }
  0x9d   :  { %v78_v32 = vrot.slane %v77_v31, 4 }
  0x9f   :  { %v79_v33 = vadd.f32 %v78_v32, %v77_v31 }
  0xa1   :  { %v80_v34 = vrot.slane %v79_v33, 2 }
  0xa3   :  { %v81_v35 = vadd.f32 %v80_v34, %v79_v33 }
  0xa5   :  { %v82_v36 = vrot.slane %v81_v35, 1 }
  0xa7   :  { %v83_v37 = vadd.f32 %v82_v36, %v81_v35 }
  0xa9   :  { %102 = vpush %v83_v37 }
  0xda   :  { %s103_s23 = spop %102 }
  0xdb   :  { %v85_v38 = vstv %s103_s23 }
  0xdc   :  { %87 = vst.msk [vmem:[#allocation2] sm:$0x1] %vm86_vm1, %v85_v38 }
  0xdd   :  { %116 = shalt.err (!%p113_p4)
}
  0xde   :  { %97 = dma.vmem_to_hbm [thread:$0]  %s95_s22, 16, %s174_s1, [#allocation3]  }
  0xdf   :  { %125 = dma.done.wait [#allocation3], 16  }
  0xe0   :  { %126 = vsyncadd [#allocation3], 4294967280 }
  0xe1   :  { %101 = vsyncpa [#allocation3], 1 }

// kernel: _lambda_.3
= control target key start
LH: loop header
LB: loop body
LE: loop exit
PB: predicated region body
PF: predicated region fallthrough
CT: control target
= control target key end

     0   :  { %s1159_s24 = smov 0   ;;  %s1385_s0 = inlined_call_operand.vmem [shape: bf16[16,50], index: 0, kind: input, shape index: {}]   ;;  %s1386_s1 = inlined_call_operand.vmem [shape: bf16[16,50], index: 1, kind: input, shape index: {}]   ;;  %s1387_s2 = inlined_call_operand.vmem [shape: bf16[16,5,50], index: 2, kind: input, shape index: {}]   ;;  %s1388_s3 = inlined_call_operand.vmem [shape: bf16[16,4,50], index: 3, kind: input, shape index: {}]   ;;  %s1389_s4 = inlined_call_operand.vmem [shape: f32[16,1], index: 4, kind: input, shape index: {}]   ;;  %s1390_s5 = inlined_call_operand.vmem [shape: f32[16,5], index: 5, kind: input, shape index: {}]   ;;  %s1391_s6 = inlined_call_operand.vmem [shape: f32[16,4], index: 6, kind: input, shape index: {}]   ;;  %s1392_s7 = inlined_call_operand.vmem [shape: f32[2,1,1], index: 7, kind: output, shape index: {}]  }
   0x1 LB: > { %s1011_s25 = sadd.s32 4294967295, %s1116_s24   ;;  %p1015_p0 = scmp.ge.s32.totalorder %s1116_s24, 1  ;;  %s1116_s24 = sphi %s1159_s24, %s17_s24  }
   0x2   : > { %p294_p1 = scmp.lt.s32.totalorder %s1116_s24, 3 }
   0x4   : > { %p295_p2 = pnand %p1015_p0, %p294_p1 }
   0x5   : > { %p349_p3 = scmp.lt.s32.totalorder (!%p295_p2), %s1011_s25, 1  ;;  %s1018_s26 = sshll.u32 (!%p295_p2), %s1011_s25, 3 }
   0x6   : > { %298 = sbr.rel (%p295_p2) target bundleno = 450 (0x1c2), region = 48  ;;  %p358_p4 = scmp.lt.s32.totalorder (!%p295_p2), %s1018_s26, 15 }
   0xb   : > { %v430_v0 = vlaneseq  ;;  %v1118_v1 = vmov 1966171168   ;;  %s1394_s25 = smov (!%p349_p3, %s1011_s25), 1  ;;  %s1396_s26 = smov (!%p358_p4, %s1018_s26), 15  ;;  %vm556_vm0 = vcmask 404480   ;;  %vm523_vm1 = vcmask 405504  }
   0xc   : > { %v428_v2 = vunpack.c.l.s4 %v1118_v1  ;;  %s1016_s27 = sshll.u32 %s1394_s25, 2  ;;  %s1021_s8 = sshll.u32 %s1396_s26, 1  ;;  %vm421_vm2 = vcmask 408576   ;;  %vm719_vm3 = vcmask 1041409   ;;  %vm721_vm4 = vcmask 1042434  }
   0xd   : > { %v431_v3 = vshrl.u32 %v430_v0, 7  ;;  %v686_v4 = vand.u32 127, %v430_v0  ;;  %s352_s30 = scalar_lea.vmem %s1385_s0, %s1016_s27  ;;  %s1180_s11 = scalar_lea.vmem %s1388_s3, %s1021_s8  ;;  %vm723_vm5 = vcmask 1043459   ;;  %vm725_vm6 = vcmask 1044484  }
   0xe   : > { %v429_v5 = vunpack.c.0.s8 %v428_v2  ;;  %v384_v8 = vld [vmem:[%s352_s30] sm:$0xf]  ;;  %s1019_s12 = sshll.u32 %s1396_s26, 2  ;;  %v406_v21 = vld [vmem:[%s1180_s11 + $0x4] sm:$0x3]  ;;  %s356_s18 = scalar_lea.vmem %s1386_s1, %s1016_s27  ;;  %vm727_vm7 = vcmask 1045509  }
   0xf   : > { %v1170_v6 = vsub.s32 %v686_v4, %v431_v3  ;;  %v1182_v9 = vunpack.c.l.bf16 %v384_v8  ;;  %s1187_s15 = scalar_lea.vmem %s1387_s2, %s1019_s12  ;;  %v404_v10 = vld [vmem:[%s1180_s11] sm:$0x3]  ;;  %v1192_v13 = vsub.s32 0, %v431_v3  ;;  %v405_v14 = vld [vmem:[%s1180_s11 + $0x2] sm:$0x3]  ;;  %v414_v30 = vunpack.c.l.bf16 %v406_v21  ;;  %s1346_s19 = sshll.u32 %s1394_s25, 3 }
  0x10   : > { %v432_v7 = vsub.s32 %v429_v5, %v431_v3  ;;  %v388_v11 = vld [vmem:[%s1187_s15] sm:$0x7]  ;;  %v389_v15 = vld [vmem:[%s1187_s15 + $0x4] sm:$0x7]  ;;  %v412_v17 = vunpack.c.l.bf16 %v404_v10  ;;  %v390_v22 = vld [vmem:[%s1187_s15 + $0x8] sm:$0x7]  ;;  %v413_v23 = vunpack.c.l.bf16 %v405_v14  ;;  %s372_s22 = scalar_lea.vmem %s1389_s4, %s1346_s19  ;;  %s376_s27 = scalar_lea.vmem %s1390_s5, %s1346_s19 }
  0x11   : > { %v426_v16 = vcombine.high %v1182_v9, %v1182_v9  ;;  %v396_v19 = vunpack.c.l.bf16 %v388_v11  ;;  %v397_v27 = vunpack.c.l.bf16 %v389_v15  ;;  %v408_v29 = vld [vmem:[%s1180_s11 + $0x8] sm:$0x3]  ;;  %v398_v31 = vunpack.c.l.bf16 %v390_v22  ;;  %v392_v37 = vld [vmem:[%s1187_s15 + $0x10] sm:$0x7]  ;;  %v407_v51 = vld [vmem:[%s1180_s11 + $0x6] sm:$0x3]  ;;  %s380_s30 = scalar_lea.vmem %s1391_s6, %s1346_s19  ;;  %s383_s14 = scalar_lea.vmem %s1392_s7, %s1394_s25 }
  0x12   : > { %v433_v12 = vrot.slane %v1182_v9, %v432_v7  ;;  %v416_v38 = vunpack.c.l.bf16 %v408_v29  ;;  %v400_v44 = vunpack.c.l.bf16 %v392_v37  ;;  %v391_v52 = vld [vmem:[%s1187_s15 + $0xc] sm:$0x7]  ;;  %v415_v54 = vunpack.c.l.bf16 %v407_v51  ;;  %v409_v61 = vld [vmem:[%s1180_s11 + $0xa] sm:$0x3]  ;;  %v393_v62 = vld [vmem:[%s1187_s15 + $0x14] sm:$0x7] }
  0x13   : > { %v440_v24 = vrot.slane %v426_v16, %v432_v7  ;;  %v399_v55 = vunpack.c.l.bf16 %v391_v52  ;;  %v417_v63 = vunpack.c.l.bf16 %v409_v61  ;;  %v401_v1 = vunpack.c.l.bf16 %v393_v62  ;;  %v410_v8 = vld [vmem:[%s1180_s11 + $0xc] sm:$0x3]  ;;  %v394_v10 = vld [vmem:[%s1187_s15 + $0x18] sm:$0x7]  ;;  %v395_v21 = vld [vmem:[%s1187_s15 + $0x1c] sm:$0x7] }
  0x14   : > { %v449_v18 = vrot.slane %v433_v12, %v432_v7  ;;  %v441_v20 = vcombine.high %v433_v12, %v433_v12  ;;  %v418_v12 = vunpack.c.l.bf16 %v410_v8  ;;  %v402_v15 = vunpack.c.l.bf16 %v394_v10  ;;  %v386_v29 = vld [vmem:[%s356_s18] sm:$0xf] }
  0x15   : > { %v456_v32 = vrot.slane %v440_v24, %v432_v7  ;;  %v442_v46 = vcombine.high %v440_v24, %v440_v24  ;;  %v403_v24 = vunpack.c.l.bf16 %v395_v21  ;;  %vm729_vm8 = vcmask 1046534  }
  0x16   : > { %v478_v25 = vrot.slane %v449_v18, %v1192_v13  ;;  %v463_v26 = vrot.slane %v441_v20, %v432_v7  ;;  %v471_v28 = vcombine.high %v449_v18, %v449_v18  ;;  %vm731_vm9 = vcmask 1047559  }
  0x17   : > { %v494_v43 = vrot.slane %v456_v32, %v1192_v13  ;;  %v470_v56 = vrot.slane %v442_v46, %v432_v7  ;;  %v472_v2 = vcombine.high %v456_v32, %v456_v32  ;;  %vm593_vm10 = vcmask 7168  }
  0x18   : > { %v548_v33 = vmul.f32 %v478_v25, %v412_v17  ;;  %v515_v34 = vmul.f32 %v478_v25, %v396_v19  ;;  %v482_v35 = vrot.slane %v463_v26, %v1192_v13  ;;  %v486_v36 = vrot.slane %v471_v28, %v1192_v13  ;;  %v411_v19 = vld [vmem:[%s1180_s11 + $0xe] sm:$0x3] }
  0x19   : > { %v473_v45 = vcombine.high %v463_v26, %v463_v26  ;;  %v552_v53 = vmul.f32 %v494_v43, %v416_v38  ;;  %v519_v59 = vmul.f32 %v494_v43, %v400_v44  ;;  %v498_v0 = vrot.slane %v470_v56, %v1192_v13 }
  0x1a   : > { %v557_v39 = vsel %vm556_vm0, %v548_v33, 0.0  ;;  %v524_v40 = vsel %vm523_vm1, %v515_v34, 0.0  ;;  %v549_v41 = vmul.f32 %v482_v35, %v413_v23  ;;  %v516_v42 = vmul.f32 %v482_v35, %v397_v27 }
  0x1b   : > { %558 = vadd.xlane.f32.xlu1 %v557_v39  ;;  %525 = vadd.xlane.f32.xlu0 %v524_v40  ;;  %v550_v49 = vmul.f32 %v486_v36, %v414_v30  ;;  %v517_v50 = vmul.f32 %v486_v36, %v398_v31  ;;  %v490_v60 = vrot.slane %v473_v45, %v1192_v13  ;;  %v569_v3 = vsel %vm556_vm0, %v552_v53, 0.0 }
  0x1c   : > { %v560_v47 = vsel %vm556_vm0, %v549_v41, 0.0  ;;  %v527_v48 = vsel %vm523_vm1, %v516_v42, 0.0  ;;  %v536_v4 = vsel %vm523_vm1, %v519_v59, 0.0  ;;  %v553_v11 = vmul.f32 %v498_v0, %v417_v63 }
  0x1d   : > { %v563_v57 = vsel %vm556_vm0, %v550_v49, 0.0  ;;  %v530_v58 = vsel %vm523_vm1, %v517_v50, 0.0  ;;  %v551_v5 = vmul.f32 %v490_v60, %v415_v54  ;;  %v518_v7 = vmul.f32 %v490_v60, %v399_v55 }
  0x1e   : > { %v502_v14 = vrot.slane %v472_v2, %v1192_v13  ;;  %v520_v18 = vmul.f32 %v498_v0, %v401_v1  ;;  %v474_v20 = vcombine.high %v470_v56, %v470_v56  ;;  %v419_v23 = vunpack.c.l.bf16 %v411_v19 }
  0x1f   : > { %561 = vadd.xlane.f32.xlu1 %v560_v47  ;;  %528 = vadd.xlane.f32.xlu0 %v527_v48  ;;  %v566_v16 = vsel %vm556_vm0, %v551_v5, 0.0  ;;  %v533_v17 = vsel %vm523_vm1, %v518_v7, 0.0  ;;  %v572_v25 = vsel %vm556_vm0, %v553_v11, 0.0  ;;  %v387_v30 = vunpack.c.l.bf16 %v386_v29 }
  0x20   : > { %v554_v22 = vmul.f32 %v502_v14, %v418_v12  ;;  %v539_v26 = vsel %vm523_vm1, %v520_v18, 0.0  ;;  %v521_v27 = vmul.f32 %v502_v14, %v402_v15  ;;  %v506_v28 = vrot.slane %v474_v20, %v1192_v13 }
  0x21   : > { %v420_v37 = vmul.f32 %v387_v30, %v1182_v9  ;;  %vm735_vm11 = vcmask 39936   ;;  %vm877_vm12 = vcmask 31744   ;;  %vm890_vm13 = vcmask 0  }
  0x22   : > { %v575_v31 = vsel %vm556_vm0, %v554_v22, 0.0  ;;  %v542_v32 = vsel %vm523_vm1, %v521_v27, 0.0  ;;  %v555_v33 = vmul.f32 %v506_v28, %v419_v23  ;;  %v522_v34 = vmul.f32 %v506_v28, %v403_v24 }
  0x23   : > { %564 = vadd.xlane.f32.xlu1 %v563_v57  ;;  %531 = vadd.xlane.f32.xlu0 %v530_v58  ;;  %v422_v13 = vsel %vm421_vm2, %v420_v37, 0.0 }
  0x24   : > { %v578_v35 = vsel %vm556_vm0, %v555_v33, 0.0  ;;  %v545_v36 = vsel %vm523_vm1, %v522_v34, 0.0 }
  0x27   : > { %570 = vadd.xlane.f32.xlu1 %v569_v3  ;;  %537 = vadd.xlane.f32.xlu0 %v536_v4 }
  0x2b   : > { %567 = vadd.xlane.f32.xlu1 %v566_v16  ;;  %534 = vadd.xlane.f32.xlu0 %v533_v17 }
  0x2f   : > { %573 = vadd.xlane.f32.xlu1 %v572_v25  ;;  %540 = vadd.xlane.f32.xlu0 %v539_v26 }
  0x33   : > { %576 = vadd.xlane.f32.xlu1 %v575_v31  ;;  %543 = vadd.xlane.f32.xlu0 %v542_v32 }
  0x37   : > { %579 = vadd.xlane.f32.xlu1 %v578_v35  ;;  %546 = vadd.xlane.f32.xlu0 %v545_v36 }
  0x3b   : > { %423 = vadd.xlane.f32.xlu0 %v422_v13 }
  0xa4   : > { %v1240_v38 = vpop.xlane.xlu1 %558  ;;  %v1242_v39 = vpop.xlane.xlu0 %525 }
  0xa5   : > { %v748_v40 = vsub.f32 0.0, %v1240_v38  ;;  %v613_v41 = vand.u32 2147483647, %v1242_v39 }
  0xa7   : > { %v764_v42 = vand.u32 2147483647, %v748_v40  ;;  %v621_v43 = vsub.f32 0.0, %v613_v41 }
  0xa8   : > { %v1248_v44 = vpop.xlane.xlu1 %561  ;;  %v1250_v9 = vpop.xlane.xlu0 %528 }
  0xa9   : > { %v772_v45 = vsub.f32 0.0, %v764_v42  ;;  %v629_v46 = vmul.f32 1.442695, %v621_v43  ;;  %v749_v47 = vsub.f32 0.0, %v1248_v44  ;;  %v614_v48 = vand.u32 2147483647, %v1250_v9 }
  0xab   : > { %v780_v49 = vmul.f32 1.442695, %v772_v45  ;;  %v765_v50 = vand.u32 2147483647, %v749_v47  ;;  %1042 = vpow2.f32 %v629_v46  ;;  %v622_v51 = vsub.f32 0.0, %v614_v48 }
  0xac   : > { %v1256_v52 = vpop.xlane.xlu1 %564  ;;  %v1258_v53 = vpop.xlane.xlu0 %531 }
  0xad   : > { %1044 = vpow2.f32 %v780_v49  ;;  %v773_v54 = vsub.f32 0.0, %v765_v50  ;;  %v750_v55 = vsub.f32 0.0, %v1256_v52  ;;  %v631_v56 = vmul.f32 1.442695, %v622_v51 }
  0xae   : > { %v615_v57 = vand.u32 2147483647, %v1258_v53 }
  0xaf   : > { %v782_v58 = vmul.f32 1.442695, %v773_v54  ;;  %v766_v59 = vand.u32 2147483647, %v750_v55  ;;  %1046 = vpow2.f32 %v631_v56  ;;  %v758_v38 = vmax.f32 %v750_v55, 0.0 }
  0xb0   : > { %v623_v60 = vsub.f32 0.0, %v615_v57  ;;  %v1264_v61 = vpop.xlane.xlu1 %570  ;;  %v1266_v62 = vpop.xlane.xlu0 %537 }
  0xb1   : > { %1048 = vpow2.f32 %v782_v58  ;;  %v774_v63 = vsub.f32 0.0, %v766_v59  ;;  %v752_v0 = vsub.f32 0.0, %v1264_v61  ;;  %v617_v2 = vand.u32 2147483647, %v1266_v62 }
  0xb2   : > { %v633_v1 = vmul.f32 1.442695, %v623_v60 }
  0xb3   : > { %v784_v3 = vmul.f32 1.442695, %v774_v63  ;;  %v768_v4 = vand.u32 2147483647, %v752_v0  ;;  %v625_v10 = vsub.f32 0.0, %v617_v2 }
  0xb4   : > { %1050 = vpow2.f32 %v633_v1  ;;  %v1272_v5 = vpop.xlane.xlu1 %567  ;;  %v1274_v7 = vpop.xlane.xlu0 %534 }
  0xb5   : > { %1052 = vpow2.f32 %v784_v3  ;;  %v776_v8 = vsub.f32 0.0, %v768_v4  ;;  %v751_v11 = vsub.f32 0.0, %v1272_v5  ;;  %v616_v12 = vand.u32 2147483647, %v1274_v7 }
  0xb6   : > { %v637_v20 = vmul.f32 1.442695, %v625_v10 }
  0xb7   : > { %v788_v14 = vmul.f32 1.442695, %v776_v8  ;;  %v767_v15 = vand.u32 2147483647, %v751_v11  ;;  %v624_v16 = vsub.f32 0.0, %v616_v12  ;;  %v759_v44 = vmax.f32 %v751_v11, 0.0 }
  0xb8   : > { %v1280_v17 = vpop.xlane.xlu1 %573  ;;  %v1282_v18 = vpop.xlane.xlu0 %540 }
  0xb9   : > { %v1043_v19 = vpop.eup %1042  ;;  %v775_v21 = vsub.f32 0.0, %v767_v15  ;;  %v753_v22 = vsub.f32 0.0, %v1280_v17  ;;  %v635_v24 = vmul.f32 1.442695, %v624_v16  ;;  %v618_v25 = vand.u32 2147483647, %v1282_v18 }
  0xba   : > { %v1045_v23 = vpop.eup %1044  ;;  %1054 = vpow2.f32 %v788_v14  ;;  %v645_v27 = vadd.f32 1.0, %v1043_v19 }
  0xbb   : > { %v786_v26 = vmul.f32 1.442695, %v775_v21  ;;  %1056 = vpow2.f32 %v635_v24  ;;  %v769_v28 = vand.u32 2147483647, %v753_v22  ;;  %v626_v29 = vsub.f32 0.0, %v618_v25 }
  0xbc   : > { %v1288_v30 = vpop.xlane.xlu1 %576  ;;  %v1290_v31 = vpop.xlane.xlu0 %543  ;;  %v796_v33 = vadd.f32 1.0, %v1045_v23  ;;  %1058 = vpow2.f32 %v637_v20 }
  0xbd   : > { %v1047_v32 = vpop.eup %1046  ;;  %v754_v34 = vsub.f32 0.0, %v1288_v30  ;;  %v619_v35 = vand.u32 2147483647, %v1290_v31  ;;  %1060 = vpow2.f32 %v786_v26  ;;  %v777_v37 = vsub.f32 0.0, %v769_v28 }
  0xbe   : > { %v1049_v36 = vpop.eup %1048  ;;  %v639_v13 = vmul.f32 1.442695, %v626_v29  ;;  %1062 = vlog2.f32 %v645_v27  ;;  %v646_v43 = vadd.f32 1.0, %v1047_v32  ;;  %v611_v5 = vmax.f32 %v1290_v31, 0.0 }
  0xbf   : > { %v770_v41 = vand.u32 2147483647, %v754_v34  ;;  %v627_v42 = vsub.f32 0.0, %v619_v35  ;;  %v790_v45 = vmul.f32 1.442695, %v777_v37  ;;  %1064 = vlog2.f32 %v796_v33 }
  0xc0   : > { %v1296_v46 = vpop.xlane.xlu1 %579  ;;  %v1298_v48 = vpop.xlane.xlu0 %546  ;;  %v797_v50 = vadd.f32 1.0, %v1049_v36 }
  0xc1   : > { %v1051_v49 = vpop.eup %1050  ;;  %v778_v51 = vsub.f32 0.0, %v770_v41  ;;  %v755_v54 = vsub.f32 0.0, %v1296_v46  ;;  %1066 = vpow2.f32 %v790_v45  ;;  %v620_v57 = vand.u32 2147483647, %v1298_v48 }
  0xc2   : > { %v1053_v56 = vpop.eup %1052  ;;  %1068 = vpow2.f32 %v639_v13  ;;  %v641_v59 = vmul.f32 1.442695, %v627_v42  ;;  %v647_v60 = vadd.f32 1.0, %v1051_v49 }
  0xc3   : > { %v792_v58 = vmul.f32 1.442695, %v778_v51  ;;  %1070 = vlog2.f32 %v646_v43  ;;  %v771_v63 = vand.u32 2147483647, %v755_v54  ;;  %v628_v1 = vsub.f32 0.0, %v620_v57 }
  0xc4   : > { %v1304_v2 = vpop.xlane.xlu0 %423  ;;  %1072 = vlog2.f32 %v797_v50  ;;  %v798_v3 = vadd.f32 1.0, %v1053_v56  ;;  %v605_v57 = vmax.f32 %v1242_v39, 0.0 }
  0xc5   : > { %v582_v4 = vsub.f32 0.0, %v1304_v2  ;;  %1074 = vpow2.f32 %v792_v58  ;;  %v779_v8 = vsub.f32 0.0, %v771_v63  ;;  %v643_v10 = vmul.f32 1.442695, %v628_v1 }
  0xc6   : > { %1076 = vpow2.f32 %v641_v59  ;;  %v606_v1 = vmax.f32 %v1250_v9, 0.0 }
  0xc7   : > { %v584_v12 = vand.u32 2147483647, %v582_v4  ;;  %v1055_v14 = vpop.eup %1054  ;;  %1078 = vlog2.f32 %v647_v60  ;;  %v794_v15 = vmul.f32 1.442695, %v779_v8  ;;  %v756_v60 = vmax.f32 %v748_v40, 0.0 }
  0xc8   : > { %v1057_v16 = vpop.eup %1056  ;;  %1080 = vlog2.f32 %v798_v3  ;;  %v800_v25 = vadd.f32 1.0, %v1055_v14  ;;  %v607_v40 = vmax.f32 %v1258_v53, 0.0 }
  0xc9   : > { %v585_v19 = vsub.f32 0.0, %v584_v12  ;;  %v1059_v20 = vpop.eup %1058  ;;  %v648_v21 = vadd.f32 1.0, %v1057_v16  ;;  %1082 = vpow2.f32 %v794_v15 }
  0xca   : > { %v1061_v23 = vpop.eup %1060  ;;  %1084 = vpow2.f32 %v643_v10  ;;  %v649_v28 = vadd.f32 1.0, %v1059_v20  ;;  %v757_v20 = vmax.f32 %v749_v47, 0.0  ;;  %v608_v47 = vmax.f32 %v1274_v7, 0.0 }
  0xcb   : > { %v586_v24 = vmul.f32 1.442695, %v585_v19  ;;  %v799_v26 = vadd.f32 1.0, %v1061_v23  ;;  %1086 = vlog2.f32 %v648_v21  ;;  %v1063_v27 = vpop.eup %1062  ;;  %v760_v23 = vmax.f32 %v752_v0, 0.0 }
  0xcc   : > { %v1065_v29 = vpop.eup %1064  ;;  %v654_v63 = vmul.f32 0.6931472, %v1063_v27 }
  0xcd   : > { %1088 = vpow2.f32 %v586_v24  ;;  %v805_v10 = vmul.f32 0.6931472, %v1065_v29  ;;  %v609_v24 = vmax.f32 %v1266_v62, 0.0 }
  0xce   : > { %1090 = vlog2.f32 %v799_v26  ;;  %v1067_v32 = vpop.eup %1066  ;;  %v669_v55 = vadd.f32 %v654_v63, %v605_v57 }
  0xcf   : > { %v1069_v33 = vpop.eup %1068  ;;  %1092 = vlog2.f32 %v800_v25  ;;  %v801_v35 = vadd.f32 1.0, %v1067_v32  ;;  %v820_v53 = vadd.f32 %v805_v10, %v756_v60 }
  0xd0   : > { %v1071_v36 = vpop.eup %1070  ;;  %1094 = vlog2.f32 %v649_v28  ;;  %v650_v37 = vadd.f32 1.0, %v1069_v33 }
  0xd1   : > { %v1073_v13 = vpop.eup %1072  ;;  %1096 = vlog2.f32 %v801_v35  ;;  %v656_v14 = vmul.f32 0.6931472, %v1071_v36  ;;  %v610_v35 = vmax.f32 %v1282_v18, 0.0  ;;  %v839_v18 = vrot.slane %v820_v53, %v1170_v6 }
  0xd2   : > { %v1075_v41 = vpop.eup %1074  ;;  %1098 = vlog2.f32 %v650_v37  ;;  %v807_v12 = vmul.f32 0.6931472, %v1073_v13  ;;  %v761_v37 = vmax.f32 %v753_v22, 0.0 }
  0xd3   : > { %v1077_v42 = vpop.eup %1076  ;;  %v802_v43 = vadd.f32 1.0, %v1075_v41  ;;  %v670_v28 = vadd.f32 %v656_v14, %v606_v1  ;;  %v763_v14 = vmax.f32 %v755_v54, 0.0 }
  0xd4   : > { %v1079_v45 = vpop.eup %1078  ;;  %v651_v49 = vadd.f32 1.0, %v1077_v42  ;;  %v821_v27 = vadd.f32 %v807_v12, %v757_v20  ;;  %v762_v42 = vmax.f32 %v754_v34, 0.0 }
  0xd5   : > { %v1081_v50 = vpop.eup %1080  ;;  %1100 = vlog2.f32 %v802_v43  ;;  %v658_v19 = vmul.f32 0.6931472, %v1079_v45  ;;  %v694_v11 = vrot.slane %v670_v28, %v1170_v6  ;;  %v690_v45 = vrot.slane %v669_v55, %v1170_v6  ;;  %v604_v55 = vld [vmem:[%s376_s27] sm:$0xff] }
  0xd6   : > { %v1083_v51 = vpop.eup %1082  ;;  %1102 = vlog2.f32 %v651_v49  ;;  %v809_v16 = vmul.f32 0.6931472, %v1081_v50  ;;  %v843_v7 = vrot.slane %v821_v27, %v1170_v6 }
  0xd7   : > { %v1085_v56 = vpop.eup %1084  ;;  %v803_v58 = vadd.f32 1.0, %v1083_v51  ;;  %v671_v32 = vadd.f32 %v658_v19, %v607_v40  ;;  %v720_v60 = vsel %vm719_vm3, %v694_v11, %v690_v45 }
  0xd8   : > { %v1087_v59 = vpop.eup %1086  ;;  %v652_v3 = vadd.f32 1.0, %v1085_v56  ;;  %v822_v29 = vadd.f32 %v809_v16, %v758_v38 }
  0xd9   : > { %1104 = vlog2.f32 %v803_v58  ;;  %v660_v25 = vmul.f32 0.6931472, %v1087_v59  ;;  %v698_v22 = vrot.slane %v671_v32, %v1170_v6  ;;  %v612_v58 = vmax.f32 %v1298_v48, 0.0 }
  0xda   : > { %v1089_v8 = vpop.eup %1088  ;;  %1106 = vlog2.f32 %v652_v3  ;;  %v847_v17 = vrot.slane %v822_v29, %v1170_v6  ;;  %v868_v59 = vsel %vm719_vm3, %v843_v7, %v839_v18 }
  0xdb   : > { %v1091_v15 = vpop.eup %1090  ;;  %v588_v39 = vadd.f32 1.0, %v1089_v8  ;;  %v672_v36 = vadd.f32 %v660_v25, %v608_v47  ;;  %v722_v10 = vsel %vm721_vm4, %v698_v22, %v720_v60  ;;  %v583_v25 = vmax.f32 %v582_v4, 0.0  ;;  %v581_v47 = vld [vmem:[%s372_s22] sm:$0xff] }
  0xdc   : > { %v811_v9 = vmul.f32 0.6931472, %v1091_v15  ;;  %v1093_v21 = vpop.eup %1092  ;;  %v869_v8 = vsel %vm721_vm4, %v847_v17, %v868_v59 }
  0xdd   : > { %1108 = vlog2.f32 %v588_v39  ;;  %v1095_v26 = vpop.eup %1094  ;;  %v813_v0 = vmul.f32 0.6931472, %v1093_v21  ;;  %v702_v30 = vrot.slane %v672_v36, %v1170_v6 }
  0xde   : > { %v1097_v52 = vpop.eup %1096  ;;  %v823_v33 = vadd.f32 %v811_v9, %v759_v44  ;;  %v662_v41 = vmul.f32 0.6931472, %v1095_v26 }
  0xdf   : > { %v1099_v61 = vpop.eup %1098  ;;  %v815_v62 = vmul.f32 0.6931472, %v1097_v52  ;;  %v824_v49 = vadd.f32 %v813_v0, %v760_v23  ;;  %v724_v20 = vsel %vm723_vm5, %v702_v30, %v722_v10 }
  0xe0   : > { %v664_v13 = vmul.f32 0.6931472, %v1099_v61  ;;  %v851_v50 = vrot.slane %v823_v33, %v1170_v6  ;;  %v673_v63 = vadd.f32 %v662_v41, %v609_v24  ;;  %v747_v61 = vld [vmem:[%s380_s30] sm:$0xff] }
  0xe1   : > { %v825_v51 = vadd.f32 %v815_v62, %v761_v37  ;;  %v855_v15 = vrot.slane %v824_v49, %v1170_v6 }
  0xe2   : > { %v1101_v43 = vpop.eup %1100  ;;  %v674_v34 = vadd.f32 %v664_v13, %v610_v35  ;;  %v870_v16 = vsel %vm723_vm5, %v851_v50, %v869_v8  ;;  %v706_v9 = vrot.slane %v673_v63, %v1170_v6 }
  0xe3   : > { %v1103_v31 = vpop.eup %1102  ;;  %v817_v56 = vmul.f32 0.6931472, %v1101_v43  ;;  %v859_v19 = vrot.slane %v825_v51, %v1170_v6  ;;  %v871_v27 = vsel %vm725_vm6, %v855_v15, %v870_v16 }
  0xe4   : > { %v666_v57 = vmul.f32 0.6931472, %v1103_v31  ;;  %v710_v38 = vrot.slane %v674_v34, %v1170_v6  ;;  %v726_v44 = vsel %vm725_vm6, %v706_v9, %v724_v20 }
  0xe5   : > { %v826_v1 = vadd.f32 %v817_v56, %v762_v42  ;;  %v872_v52 = vsel %vm727_vm7, %v859_v19, %v871_v27 }
  0xe6   : > { %v1105_v3 = vpop.eup %1104  ;;  %v675_v12 = vadd.f32 %v666_v57, %v611_v5  ;;  %v728_v2 = vsel %vm727_vm7, %v710_v38, %v726_v44 }
  0xe7   : > { %v1107_v48 = vpop.eup %1106  ;;  %v819_v39 = vmul.f32 0.6931472, %v1105_v3  ;;  %v863_v46 = vrot.slane %v826_v1, %v1170_v6 }
  0xe8   : > { %v668_v54 = vmul.f32 0.6931472, %v1107_v48  ;;  %v714_v21 = vrot.slane %v675_v12, %v1170_v6 }
  0xe9   : > { %v827_v23 = vadd.f32 %v819_v39, %v763_v14  ;;  %v873_v29 = vsel %vm729_vm8, %v863_v46, %v872_v52 }
  0xea   : > { %v1109_v40 = vpop.eup %1108  ;;  %v676_v24 = vadd.f32 %v668_v54, %v612_v58  ;;  %v730_v32 = vsel %vm729_vm8, %v714_v21, %v728_v2 }
  0xeb   : > { %v590_v26 = vmul.f32 0.6931472, %v1109_v40  ;;  %v867_v28 = vrot.slane %v827_v23, %v1170_v6 }
  0xec   : > { %v718_v53 = vrot.slane %v676_v24, %v1170_v6 }
  0xed   : > { %v591_v4 = vadd.f32 %v590_v26, %v583_v25  ;;  %v874_v0 = vsel %vm731_vm9, %v867_v28, %v873_v29 }
  0xee   : > { %v732_v33 = vsel %vm731_vm9, %v718_v53, %v730_v32  ;;  %v876_v37 = vmul.f32 %v874_v0, %v747_v61 }
  0xef   : > { %v592_v62 = vmul.f32 %v591_v4, %v581_v47  ;;  %v734_v35 = vmul.f32 %v732_v33, %v604_v55 }
  0xf0   : > { %v878_v6 = vsel %vm877_vm12, %v876_v37, 0.0 }
  0xf1   : > { %v594_v36 = vsel %vm593_vm10, %v592_v62, 0.0  ;;  %v736_v13 = vsel %vm735_vm11, %v734_v35, 0.0 }
  0xf2   : > { %595 = vadd.xlane.f32.xlu1 %v594_v36  ;;  %737 = vadd.xlane.f32.xlu0 %v736_v13 }
  0xf6   : > { %879 = vadd.xlane.f32.xlu1 %v878_v6 }
 0x17b   : > { %v596_v5 = vpop.xlane.xlu1 %595  ;;  %v738_v7 = vpop.xlane.xlu0 %737 }
 0x17c   : > { %v597_v11 = vrot.slane %v596_v5, 4  ;;  %v739_v41 = vrot.slane %v738_v7, 4 }
 0x17e   : > { %v598_v42 = vadd.f32 %v597_v11, %v596_v5  ;;  %v740_v43 = vadd.f32 %v739_v41, %v738_v7 }
 0x17f   : > { %v880_v18 = vpop.xlane.xlu1 %879 }
 0x180   : > { %v599_v45 = vrot.slane %v598_v42, 2  ;;  %v881_v17 = vrot.slane %v880_v18, 4  ;;  %v741_v22 = vrot.slane %v740_v43, 2 }
 0x182   : > { %v882_v31 = vadd.f32 %v881_v17, %v880_v18  ;;  %v600_v49 = vadd.f32 %v599_v45, %v598_v42  ;;  %v742_v50 = vadd.f32 %v741_v22, %v740_v43 }
 0x184   : > { %v883_v51 = vrot.slane %v882_v31, 2  ;;  %v601_v56 = vrot.slane %v600_v49, 1  ;;  %v743_v30 = vrot.slane %v742_v50, 1 }
 0x186   : > { %v884_v34 = vadd.f32 %v883_v51, %v882_v31  ;;  %v602_v57 = vadd.f32 %v601_v56, %v600_v49  ;;  %v744_v58 = vadd.f32 %v743_v30, %v742_v50 }
 0x188   : > { %1027 = vpush %v602_v57  ;;  %v885_v59 = vrot.slane %v884_v34, 1 }
 0x189   : > { %1029 = vpush %v744_v58 }
 0x18a   : > { %v886_v60 = vadd.f32 %v885_v59, %v884_v34 }
 0x18c   : > { %1031 = vpush %v886_v60 }
 0x1b9   : > { %s1028_s8 = spop %1027 }
 0x1ba   : > { %s1030_s9 = spop %1029 }
 0x1bb   : > { %s746_s10 = sadd.f32 %s1030_s9, %s1028_s8 }
 0x1bd   : > { %s1032_s11 = spop %1031 }
 0x1be   : > { %s888_s15 = sadd.f32 %s1032_s11, %s746_s10 }
 0x1c0   : > { %v889_v63 = vstv %s888_s15 }
 0x1c1   : > { %891 = vst.msk [vmem:[%s383_s14] sm:$0x1] %vm890_vm13, %v889_v63 }
 0x1c2 PF: > { %s17_s24 = sadd.s32 1, %s1116_s24  }
 0x1c3   : > { %p14_p5 = scmp.ge.s32.totalorder %s17_s24, 4  }
 0x1c5   :  { %16 = sbr.rel (!%p14_p5) target bundleno = 1 (0x1), region = 96 }

</bundles_post_ra>
